<compile_context>
chip_gen: v5e
topology: v5e:2x2
jax: 0.10.0
libtpu: 0.0.40
codegen_flags: <defaults>
</compile_context>

<pallas_src>
import functools

import jax
import jax.numpy as jnp
from jax.experimental import pallas as pl
from jax.experimental.pallas import tpu as pltpu

_LANE = 128
_SUBLANE = 8
_MAX_TILE_S = 2048       # 2048 sublane-rows x 128 lanes = 256K elements / step
_UNROLL_MAX_C = 32       # unrolled class chain for small C (nnUNet typical C<=10)


def _cdiv(a, b):
    return -(-a // b)


def _tensorcores_per_device():
    """Split factor for the leading 'parallel' grid axis.

    2 on megacore / 2-TC chips (v4, v5p, v7x), 1 on single-TC chips where the
    extra axis would only add a fully-masked duplicate step. Defaults to 2 when
    unknown (harmless: duplicate steps are masked out).
    """
    try:
        kind = jax.devices()[0].device_kind.lower()
    except Exception:
        return 2
    for tag in ("v2", "v3", "v5 lite", "v5litepod", "v5e", "v6 lite", "v6e"):
        if tag in kind:
            return 1
    return 2


def _vmem_capacity_bytes():
    try:
        info = pltpu.get_tpu_info()
        cap = getattr(info, "vmem_capacity_bytes", None)
        if cap:
            return int(cap)
    except Exception:
        pass
    return 64 << 20   # conservative fallback (v7x physical VMEM)


def _focal_kernel(pred_ref, tgt_ref, *refs, gamma, num_classes, hw, tile_s,
                  tiles_per_core, ignore_index, mask_geom):
    track_count = ignore_index is not None
    if track_count:
        sum_ref, cnt_ref, acc_ref, cnt_acc_ref = refs
    else:
        sum_ref, acc_ref = refs
        cnt_ref = cnt_acc_ref = None

    p = pl.program_id(0)   # core-split index (megacore / 2-TC chips)
    i = pl.program_id(1)   # batch index
    t = pl.program_id(2)   # spatial tile index within this core's share

    @pl.when((i == 0) & (t == 0))
    def _init():
        acc_ref[...] = jnp.zeros_like(acc_ref)
        if track_count:
            cnt_acc_ref[...] = jnp.zeros_like(cnt_acc_ref)

    tgt = tgt_ref[...]                                   # (tile_s, 128) int32

    # ---- class-axis softmax + target gather (pure VPU/EUP elementwise) ----
    if num_classes <= _UNROLL_MAX_C:
        # Unrolled chain; max pass in native dtype (exact), cast once.
        m = pred_ref[0]
        for cc in range(1, num_classes):
            m = jnp.maximum(m, pred_ref[cc])
        m = m.astype(jnp.float32)
        s = st = et = None
        for cc in range(num_classes):
            sh_c = pred_ref[cc].astype(jnp.float32) - m  # shifted logits
            ex_c = jnp.exp(sh_c)
            s = ex_c if s is None else s + ex_c
            if cc == 0:
                st, et = sh_c, ex_c
            else:
                sel = tgt == cc                          # gather at target class
                st = jnp.where(sel, sh_c, st)
                et = jnp.where(sel, ex_c, et)
    else:
        # Large-C: loop over classes (bounded tile-sized temporaries, no
        # (C, tile_s, 128) materialization that would blow VMEM on v7x).
        def max_body(cc, m):
            return jnp.maximum(m, pred_ref[cc])
        m = jax.lax.fori_loop(1, num_classes, max_body, pred_ref[0])
        m = m.astype(jnp.float32)
        sh0 = pred_ref[0].astype(jnp.float32) - m
        ex0 = jnp.exp(sh0)

        def acc_body(cc, carry):
            s, st, et = carry
            sh_c = pred_ref[cc].astype(jnp.float32) - m
            ex_c = jnp.exp(sh_c)
            sel = tgt == cc
            return (s + ex_c,
                    jnp.where(sel, sh_c, st),
                    jnp.where(sel, ex_c, et))
        s, st, et = jax.lax.fori_loop(1, num_classes, acc_body, (ex0, sh0, ex0))

    # log p_t (clamped <= 0 so (1 - pt) can never go negative / NaN)
    log_pt = jnp.minimum(st - jnp.log(s), 0.0)
    # pt from the already-computed exp(shifted): no extra EUP exp.
    inv_s = pl.reciprocal(s, approx=True)
    inv_s = inv_s * (2.0 - s * inv_s)                    # one Newton step (VPU)
    pt = et * inv_s
    one_m_pt = jnp.maximum(1.0 - pt, 0.0)                # guard ULP overshoot

    g_int = int(gamma)
    if float(gamma) == float(g_int) and g_int >= 0:
        wgt = jnp.ones_like(one_m_pt)                    # integer gamma: VPU muls
        for _ in range(g_int):
            wgt = wgt * one_m_pt
    else:
        wgt = one_m_pt ** jnp.float32(gamma)
    focal = -wgt * log_pt                                # (tile_s, 128) f32

    tile_idx = p * tiles_per_core + t                    # UNclamped step index

    def geom_valid():
        sub = jax.lax.broadcasted_iota(jnp.int32, (tile_s, _LANE), 0)
        lane = jax.lax.broadcasted_iota(jnp.int32, (tile_s, _LANE), 1)
        col = (tile_idx * tile_s + sub) * _LANE + lane
        return col < hw

    if track_count:
        # ignore_index path: target mask always; geometric part only if needed.
        valid = tgt != ignore_index
        if mask_geom:
            valid = valid & geom_valid()
        acc_ref[...] = acc_ref[...] + jnp.where(valid, focal, 0.0)
        cnt_acc_ref[...] = cnt_acc_ref[...] + valid.astype(jnp.float32)
    else:
        if not mask_geom:
            # Statically all-valid: no iota / compare / select at all.
            acc_ref[...] = acc_ref[...] + focal
        else:
            # Mask only the partial edge tile and duplicated (clamped) steps.
            full_tiles = hw // (tile_s * _LANE)
            is_edge = tile_idx >= full_tiles

            @pl.when(jnp.logical_not(is_edge))
            def _interior():
                acc_ref[...] = acc_ref[...] + focal

            @pl.when(is_edge)
            def _edge():
                acc_ref[...] = acc_ref[...] + jnp.where(geom_valid(), focal, 0.0)

    @pl.when((i == pl.num_programs(1) - 1) & (t == pl.num_programs(2) - 1))
    def _finalize():
        sum_ref[...] = jnp.sum(acc_ref[...]).reshape(1, 1, 1)
        if track_count:
            cnt_ref[...] = jnp.sum(cnt_acc_ref[...]).reshape(1, 1, 1)


def focal_loss(pred, target, *, gamma=2.0, ignore_index=None, max_tile_s=None):
    """pred: (N, C, *spatial) float; target: (N, *spatial) int. Mean focal loss.

    max_tile_s is a test hook to force small tiles (exercises the partial-edge
    and core-split masking paths on small inputs).
    """
    n, c = int(pred.shape[0]), int(pred.shape[1])
    pred3 = pred.reshape(n, c, -1)                       # free reshape, native dtype
    hw = int(pred3.shape[2])
    tgt2 = target.reshape(n, -1).astype(jnp.int32)

    itemsize = int(jnp.dtype(pred.dtype).itemsize)
    track_count = ignore_index is not None

    # ---- layout (N, C, S, 128): free when hw % 128 == 0; ragged last tile is
    # a partial Pallas block handled by the in-kernel mask (no whole-tensor pad).
    if hw % _LANE == 0:
        s_total = hw // _LANE
    else:
        # TODO(synk): rare 128-unaligned tail still costs one extra HBM copy of
        # pred (pad to next multiple of 128); nnUNet patch sizes are aligned.
        s_total = _cdiv(hw, _LANE)
        pad = s_total * _LANE - hw
        pred3 = jnp.pad(pred3, ((0, 0), (0, 0), (0, pad)))
        tgt2 = jnp.pad(tgt2, ((0, 0), (0, pad)))
    pred4 = pred3.reshape(n, c, s_total, _LANE)          # free split of last dim
    tgt3 = tgt2.reshape(n, s_total, _LANE)

    # ---- tile sizing from the per-chip VMEM budget and the native dtype ----
    vmem_cap = _vmem_capacity_bytes()
    vmem_limit = min(vmem_cap * 3 // 4, 112 << 20)       # explicit scoped limit
    tile_budget = vmem_limit * 2 // 3                    # slack for Mosaic temps
    per_row = (2 * c * _LANE * itemsize                  # pred block, double-buffered
               + 2 * _LANE * 4                           # target block, double-buffered
               + (2 if track_count else 1) * _LANE * 4   # accumulator scratch
               + 10 * _LANE * 4)                         # elementwise temporaries
    tile_s = (tile_budget // per_row) // _SUBLANE * _SUBLANE
    tile_s = max(_SUBLANE, min(tile_s, _MAX_TILE_S))
    if max_tile_s is not None:
        tile_s = max(_SUBLANE, min(tile_s, (max_tile_s // _SUBLANE) * _SUBLANE))
    if tile_s >= s_total:
        tile_s = s_total                                 # full-extent block (8-div waived)

    n_tiles = _cdiv(s_total, tile_s)
    ncores = max(1, min(_tensorcores_per_device(), n_tiles))
    tiles_per_core = _cdiv(n_tiles, ncores)
    overflow = tiles_per_core * ncores != n_tiles        # duplicated (masked) steps
    mask_geom = (n_tiles * tile_s * _LANE != hw) or overflow

    kernel = functools.partial(
        _focal_kernel, gamma=gamma, num_classes=c, hw=hw, tile_s=tile_s,
        tiles_per_core=tiles_per_core, ignore_index=ignore_index,
        mask_geom=mask_geom)

    def tile_of(p, t):
        tile = p * tiles_per_core + t
        if overflow:                                     # clamp duplicate steps' DMA
            tile = jnp.minimum(tile, n_tiles - 1)
        return tile

    def pred_map(p, i, t):
        return (i, 0, tile_of(p, t), 0)

    def tgt_map(p, i, t):
        return (i, tile_of(p, t), 0)

    partial_shape = jax.ShapeDtypeStruct((ncores, 1, 1), jnp.float32)
    partial_spec = pl.BlockSpec((1, 1, 1), lambda p, i, t: (p, 0, 0))

    out_shape = (partial_shape, partial_shape) if track_count else partial_shape
    out_specs = (partial_spec, partial_spec) if track_count else partial_spec
    scratch = [pltpu.VMEM((tile_s, _LANE), jnp.float32)]
    if track_count:
        scratch.append(pltpu.VMEM((tile_s, _LANE), jnp.float32))

    out = pl.pallas_call(
        kernel,
        out_shape=out_shape,
        grid_spec=pltpu.PrefetchScalarGridSpec(
            num_scalar_prefetch=0,
            grid=(ncores, n, tiles_per_core),
            in_specs=[
                pl.BlockSpec((None, c, tile_s, _LANE), pred_map),  # batch squeezed
                pl.BlockSpec((None, tile_s, _LANE), tgt_map),
            ],
            out_specs=out_specs,
            scratch_shapes=scratch),
        compiler_params=pltpu.CompilerParams(
            # Leading axis shards across TensorCores on megacore / 2-TC chips.
            # (If xprof shows a single busy TC on v7x, switch to CORE_PARALLEL.)
            dimension_semantics=("parallel", "arbitrary", "arbitrary"),
            vmem_limit_bytes=int(vmem_limit)),
    )(pred4, tgt3)

    if track_count:
        out_sum, out_cnt = out
        # NOTE: if every element is ignored this divides by zero (NaN), same as
        # the PyTorch reference.
        return (jnp.sum(out_sum) / jnp.sum(out_cnt)).astype(jnp.float32)
    return (jnp.sum(out) / jnp.float32(n * hw)).astype(jnp.float32)


def _focal_loss_ref(pred, target, gamma=2.0, ignore_index=None):
    """Plain-JAX reference mirroring the PyTorch module."""
    logp = jax.nn.log_softmax(pred.astype(jnp.float32), axis=1)   # (N,C,...)
    tgt = target.astype(jnp.int32)
    log_pt = jnp.take_along_axis(logp, tgt[:, None], axis=1)[:, 0]
    pt = jnp.exp(log_pt)
    fl = -((1.0 - pt) ** gamma) * log_pt
    if ignore_index is not None:
        mask = tgt != ignore_index
        return jnp.sum(jnp.where(mask, fl, 0.0)) / jnp.sum(mask)
    return jnp.mean(fl)


if __name__ == "__main__":
    key = jax.random.PRNGKey(0)
    k1, k2, k3, k4, k5, k6 = jax.random.split(key, 6)

    # ---- case 1: small aligned input (single full-extent tile, mask skipped) ----
    N, C, H, W = 2, 4, 16, 16
    pred = jax.random.normal(k1, (N, C, H, W), dtype=jnp.float32)
    target = jax.random.randint(k2, (N, H, W), 0, C, dtype=jnp.int32)

    loss = jax.block_until_ready(focal_loss(pred, target, gamma=2.0))
    ref = _focal_loss_ref(pred, target, gamma=2.0)
    assert jnp.allclose(loss, ref, rtol=1e-4, atol=1e-5), (loss, ref)

    loss_ig = jax.block_until_ready(
        focal_loss(pred, target, gamma=2.0, ignore_index=0))
    ref_ig = _focal_loss_ref(pred, target, gamma=2.0, ignore_index=0)
    assert jnp.allclose(loss_ig, ref_ig, rtol=1e-4, atol=1e-5), (loss_ig, ref_ig)

    # ---- case 2: partial edge tile + core-split duplicate steps (forced small
    # tiles) -> exercises the no-pad ragged path and the edge-only masking ----
    N2, C2, H2, W2 = 2, 5, 40, 128
    pred2 = jax.random.normal(k3, (N2, C2, H2, W2), dtype=jnp.float32)
    target2 = jax.random.randint(k4, (N2, H2, W2), 0, C2, dtype=jnp.int32)

    loss2 = jax.block_until_ready(focal_loss(pred2, target2, gamma=2.0,
                                             max_tile_s=16))
    ref2 = _focal_loss_ref(pred2, target2, gamma=2.0)
    assert jnp.allclose(loss2, ref2, rtol=1e-4, atol=1e-5), (loss2, ref2)

    loss2_ig = jax.block_until_ready(
        focal_loss(pred2, target2, gamma=2.0, ignore_index=1, max_tile_s=16))
    ref2_ig = _focal_loss_ref(pred2, target2, gamma=2.0, ignore_index=1)
    assert jnp.allclose(loss2_ig, ref2_ig, rtol=1e-4, atol=1e-5), (loss2_ig, ref2_ig)

    # ---- case 3: large class count -> class-chunked fori_loop path ----
    N3, C3, H3, W3 = 1, 34, 8, 16
    pred3 = jax.random.normal(k5, (N3, C3, H3, W3), dtype=jnp.float32)
    target3 = jax.random.randint(k6, (N3, H3, W3), 0, C3, dtype=jnp.int32)

    loss3 = jax.block_until_ready(focal_loss(pred3, target3, gamma=2.0))
    ref3 = _focal_loss_ref(pred3, target3, gamma=2.0)
    assert jnp.allclose(loss3, ref3, rtol=1e-4, atol=1e-5), (loss3, ref3)

    print("KERNEL_OK")
</pallas_src>

<mosaic_0001>
module attributes {stable_mosaic.version = 11 : i64} {
  func.func @_focal_kernel(%arg0: i32, %arg1: i32, %arg2: i32, %arg3: memref<1x4x2x128xf32, #tpu.memory_space<vmem>>, %arg4: memref<1x2x128xi32, #tpu.memory_space<vmem>>, %arg5: memref<1x1x1xf32, #tpu.memory_space<vmem>>, %arg6: memref<2x128xf32, #tpu.memory_space<vmem>>) attributes {dimension_semantics = [#tpu.dimension_semantics<parallel>, #tpu.dimension_semantics<arbitrary>, #tpu.dimension_semantics<arbitrary>], iteration_bounds = array<i64: 1, 2, 1>, scalar_prefetch = 0 : i64, scratch_operands = 1 : i64, tpu.core_type = #tpu.core_type<tc>, window_params = [{transform_indices = @transform_0, window_bounds = array<i64: 1, 4, 2, 128>}, {transform_indices = @transform_1, window_bounds = array<i64: 1, 2, 128>}, {transform_indices = @transform_2, window_bounds = array<i64: 1, 1, 1>}]} {
    %c0_i32 = arith.constant 0 : i32
    %0 = arith.cmpi eq, %arg1, %c0_i32 : i32
    %c0_i32_0 = arith.constant 0 : i32
    %1 = arith.cmpi eq, %arg2, %c0_i32_0 : i32
    %2 = arith.andi %0, %1 : i1
    %3 = arith.extui %2 : i1 to i32
    %c0_i32_1 = arith.constant 0 : i32
    %4 = arith.cmpi ne, %3, %c0_i32_1 : i32
    scf.if %4 {
      %cst_45 = arith.constant 0.000000e+00 : f32
      %77 = vector.broadcast %cst_45 : f32 to vector<2x128xf32>
      %c0_46 = arith.constant 0 : index
      %c0_47 = arith.constant 0 : index
      %78 = vector.load %arg6[%c0_46, %c0_47] : memref<2x128xf32, #tpu.memory_space<vmem>>, vector<2x128xf32>
      tpu.vector_store %arg6[%c0_46, %c0_47], %77 {strides = array<i32>} : memref<2x128xf32, #tpu.memory_space<vmem>>, vector<2x128xf32>,
    } else {
    }
    %c0 = arith.constant 0 : index
    %c0_2 = arith.constant 0 : index
    %c0_3 = arith.constant 0 : index
    %5 = vector.load %arg4[%c0, %c0_2, %c0_3] : memref<1x2x128xi32, #tpu.memory_space<vmem>>, vector<1x2x128xi32>
    %6 = vector.shape_cast %5 : vector<1x2x128xi32> to vector<2x128xi32>
    %c0_4 = arith.constant 0 : index
    %c0_5 = arith.constant 0 : index
    %c0_6 = arith.constant 0 : index
    %c0_7 = arith.constant 0 : index
    %7 = vector.load %arg3[%c0_4, %c0_5, %c0_6, %c0_7] : memref<1x4x2x128xf32, #tpu.memory_space<vmem>>, vector<1x1x2x128xf32>
    %8 = vector.shape_cast %7 : vector<1x1x2x128xf32> to vector<2x128xf32>
    %c0_8 = arith.constant 0 : index
    %c1 = arith.constant 1 : index
    %c0_9 = arith.constant 0 : index
    %c0_10 = arith.constant 0 : index
    %9 = vector.load %arg3[%c0_8, %c1, %c0_9, %c0_10] : memref<1x4x2x128xf32, #tpu.memory_space<vmem>>, vector<1x1x2x128xf32>
    %10 = vector.shape_cast %9 : vector<1x1x2x128xf32> to vector<2x128xf32>
    %11 = arith.maximumf %8, %10 : vector<2x128xf32>
    %c0_11 = arith.constant 0 : index
    %c2 = arith.constant 2 : index
    %c0_12 = arith.constant 0 : index
    %c0_13 = arith.constant 0 : index
    %12 = vector.load %arg3[%c0_11, %c2, %c0_12, %c0_13] : memref<1x4x2x128xf32, #tpu.memory_space<vmem>>, vector<1x1x2x128xf32>
    %13 = vector.shape_cast %12 : vector<1x1x2x128xf32> to vector<2x128xf32>
    %14 = arith.maximumf %11, %13 : vector<2x128xf32>
    %c0_14 = arith.constant 0 : index
    %c3 = arith.constant 3 : index
    %c0_15 = arith.constant 0 : index
    %c0_16 = arith.constant 0 : index
    %15 = vector.load %arg3[%c0_14, %c3, %c0_15, %c0_16] : memref<1x4x2x128xf32, #tpu.memory_space<vmem>>, vector<1x1x2x128xf32>
    %16 = vector.shape_cast %15 : vector<1x1x2x128xf32> to vector<2x128xf32>
    %17 = arith.maximumf %14, %16 : vector<2x128xf32>
    %c0_17 = arith.constant 0 : index
    %c0_18 = arith.constant 0 : index
    %c0_19 = arith.constant 0 : index
    %c0_20 = arith.constant 0 : index
    %18 = vector.load %arg3[%c0_17, %c0_18, %c0_19, %c0_20] : memref<1x4x2x128xf32, #tpu.memory_space<vmem>>, vector<1x1x2x128xf32>
    %19 = vector.shape_cast %18 : vector<1x1x2x128xf32> to vector<2x128xf32>
    %20 = arith.subf %19, %17 : vector<2x128xf32>
    %21 = math.exp %20 : vector<2x128xf32>
    %c0_21 = arith.constant 0 : index
    %c1_22 = arith.constant 1 : index
    %c0_23 = arith.constant 0 : index
    %c0_24 = arith.constant 0 : index
    %22 = vector.load %arg3[%c0_21, %c1_22, %c0_23, %c0_24] : memref<1x4x2x128xf32, #tpu.memory_space<vmem>>, vector<1x1x2x128xf32>
    %23 = vector.shape_cast %22 : vector<1x1x2x128xf32> to vector<2x128xf32>
    %24 = arith.subf %23, %17 : vector<2x128xf32>
    %25 = math.exp %24 : vector<2x128xf32>
    %26 = arith.addf %21, %25 : vector<2x128xf32>
    %c1_i32 = arith.constant 1 : i32
    %27 = vector.broadcast %c1_i32 : i32 to vector<2x128xi32>
    %28 = arith.cmpi eq, %6, %27 : vector<2x128xi32>
    %29 = arith.select %28, %24, %20 : vector<2x128xi1>, vector<2x128xf32>
    %30 = arith.select %28, %25, %21 : vector<2x128xi1>, vector<2x128xf32>
    %c0_25 = arith.constant 0 : index
    %c2_26 = arith.constant 2 : index
    %c0_27 = arith.constant 0 : index
    %c0_28 = arith.constant 0 : index
    %31 = vector.load %arg3[%c0_25, %c2_26, %c0_27, %c0_28] : memref<1x4x2x128xf32, #tpu.memory_space<vmem>>, vector<1x1x2x128xf32>
    %32 = vector.shape_cast %31 : vector<1x1x2x128xf32> to vector<2x128xf32>
    %33 = arith.subf %32, %17 : vector<2x128xf32>
    %34 = math.exp %33 : vector<2x128xf32>
    %35 = arith.addf %26, %34 : vector<2x128xf32>
    %c2_i32 = arith.constant 2 : i32
    %36 = vector.broadcast %c2_i32 : i32 to vector<2x128xi32>
    %37 = arith.cmpi eq, %6, %36 : vector<2x128xi32>
    %38 = arith.select %37, %33, %29 : vector<2x128xi1>, vector<2x128xf32>
    %39 = arith.select %37, %34, %30 : vector<2x128xi1>, vector<2x128xf32>
    %c0_29 = arith.constant 0 : index
    %c3_30 = arith.constant 3 : index
    %c0_31 = arith.constant 0 : index
    %c0_32 = arith.constant 0 : index
    %40 = vector.load %arg3[%c0_29, %c3_30, %c0_31, %c0_32] : memref<1x4x2x128xf32, #tpu.memory_space<vmem>>, vector<1x1x2x128xf32>
    %41 = vector.shape_cast %40 : vector<1x1x2x128xf32> to vector<2x128xf32>
    %42 = arith.subf %41, %17 : vector<2x128xf32>
    %43 = math.exp %42 : vector<2x128xf32>
    %44 = arith.addf %35, %43 : vector<2x128xf32>
    %c3_i32 = arith.constant 3 : i32
    %45 = vector.broadcast %c3_i32 : i32 to vector<2x128xi32>
    %46 = arith.cmpi eq, %6, %45 : vector<2x128xi32>
    %47 = arith.select %46, %42, %38 : vector<2x128xi1>, vector<2x128xf32>
    %48 = arith.select %46, %43, %39 : vector<2x128xi1>, vector<2x128xf32>
    %49 = math.log %44 : vector<2x128xf32>
    %50 = arith.subf %47, %49 : vector<2x128xf32>
    %cst = arith.constant 0.000000e+00 : f32
    %51 = vector.broadcast %cst : f32 to vector<2x128xf32>
    %52 = arith.minimumf %50, %51 : vector<2x128xf32>
    %53 = tpu.reciprocal %44 {approx = true} : vector<2x128xf32> -> vector<2x128xf32>
    %54 = arith.mulf %44, %53 : vector<2x128xf32>
    %cst_33 = arith.constant 2.000000e+00 : f32
    %55 = vector.broadcast %cst_33 : f32 to vector<2x128xf32>
    %56 = arith.subf %55, %54 : vector<2x128xf32>
    %57 = arith.mulf %53, %56 : vector<2x128xf32>
    %58 = arith.mulf %48, %57 : vector<2x128xf32>
    %cst_34 = arith.constant 1.000000e+00 : f32
    %59 = vector.broadcast %cst_34 : f32 to vector<2x128xf32>
    %60 = arith.subf %59, %58 : vector<2x128xf32>
    %cst_35 = arith.constant 0.000000e+00 : f32
    %61 = vector.broadcast %cst_35 : f32 to vector<2x128xf32>
    %62 = arith.maximumf %60, %61 : vector<2x128xf32>
    %cst_36 = arith.constant 1.000000e+00 : f32
    %63 = vector.broadcast %cst_36 : f32 to vector<2x128xf32>
    %64 = arith.mulf %63, %62 : vector<2x128xf32>
    %65 = arith.mulf %64, %62 : vector<2x128xf32>
    %cst_37 = arith.constant 0.000000e+00 : f32
    %66 = vector.broadcast %cst_37 : f32 to vector<2x128xf32>
    %67 = arith.subf %66, %65 : vector<2x128xf32>
    %68 = arith.mulf %67, %52 : vector<2x128xf32>
    %c0_38 = arith.constant 0 : index
    %c0_39 = arith.constant 0 : index
    %69 = vector.load %arg6[%c0_38, %c0_39] : memref<2x128xf32, #tpu.memory_space<vmem>>, vector<2x128xf32>
    %70 = arith.addf %69, %68 : vector<2x128xf32>
    %c0_40 = arith.constant 0 : index
    %c0_41 = arith.constant 0 : index
    %71 = vector.load %arg6[%c0_40, %c0_41] : memref<2x128xf32, #tpu.memory_space<vmem>>, vector<2x128xf32>
    tpu.vector_store %arg6[%c0_40, %c0_41], %70 {strides = array<i32>} : memref<2x128xf32, #tpu.memory_space<vmem>>, vector<2x128xf32>,
    %c1_i32_42 = arith.constant 1 : i32
    %72 = arith.cmpi eq, %arg1, %c1_i32_42 : i32
    %c0_i32_43 = arith.constant 0 : i32
    %73 = arith.cmpi eq, %arg2, %c0_i32_43 : i32
    %74 = arith.andi %72, %73 : i1
    %75 = arith.extui %74 : i1 to i32
    %c0_i32_44 = arith.constant 0 : i32
    %76 = arith.cmpi ne, %75, %c0_i32_44 : i32
    scf.if %76 {
      %c0_45 = arith.constant 0 : index
      %c0_46 = arith.constant 0 : index
      %77 = vector.load %arg6[%c0_45, %c0_46] : memref<2x128xf32, #tpu.memory_space<vmem>>, vector<2x128xf32>
      %78 = vector.shape_cast %77 : vector<2x128xf32> to vector<1x2x128xf32>
      %cst_47 = arith.constant dense<0.000000e+00> : vector<1xf32>
      %79 = vector.multi_reduction <add>, %78, %cst_47 [1, 2] : vector<1x2x128xf32> to vector<1xf32>
      %80 = vector.shape_cast %79 : vector<1xf32> to vector<1x1x1xf32>
      %81 = vector.extract %80[0, 0, 0] : f32 from vector<1x1x1xf32>
      %82 = vector.broadcast %81 : f32 to vector<1x1x1xf32>
      %c0_48 = arith.constant 0 : index
      %c0_49 = arith.constant 0 : index
      %c0_50 = arith.constant 0 : index
      %83 = vector.load %arg5[%c0_48, %c0_49, %c0_50] : memref<1x1x1xf32, #tpu.memory_space<vmem>>, vector<1x1x1xf32>
      tpu.vector_store %arg5[%c0_48, %c0_49, %c0_50], %82 {strides = array<i32>} : memref<1x1x1xf32, #tpu.memory_space<vmem>>, vector<1x1x1xf32>,
    } else {
    }
    return
  }
  func.func @transform_0(%arg0: i32, %arg1: i32, %arg2: i32) -> (i32, i32, i32, i32) {
    %c1_i32 = arith.constant 1 : i32
    %0 = arith.muli %arg0, %c1_i32 : i32
    %1 = arith.addi %0, %arg2 : i32
    %c0_i32 = arith.constant 0 : i32
    %c0_i32_0 = arith.constant 0 : i32
    %c0_i32_1 = arith.constant 0 : i32
    return %arg1, %c0_i32, %1, %c0_i32_0 : i32, i32, i32, i32
  }
  func.func @transform_1(%arg0: i32, %arg1: i32, %arg2: i32) -> (i32, i32, i32) {
    %c1_i32 = arith.constant 1 : i32
    %0 = arith.muli %arg0, %c1_i32 : i32
    %1 = arith.addi %0, %arg2 : i32
    %c0_i32 = arith.constant 0 : i32
    %c0_i32_0 = arith.constant 0 : i32
    return %arg1, %1, %c0_i32 : i32, i32, i32
  }
  func.func @transform_2(%arg0: i32, %arg1: i32, %arg2: i32) -> (i32, i32, i32) {
    %c0_i32 = arith.constant 0 : i32
    %c0_i32_0 = arith.constant 0 : i32
    %c0_i32_1 = arith.constant 0 : i32
    return %arg0, %c0_i32, %c0_i32_0 : i32, i32, i32
  }
}

</mosaic_0001>

<bundles_post_ra>
// kernel: tpu_custom_call.1
= control target key start
LH: loop header
LB: loop body
LE: loop exit
PB: predicated region body
PF: predicated region fallthrough
CT: control target
= control target key end

     0   :  { %7 = vsyncpa [#allocation4], 0  ;;  %s796_s0 = inlined_call_operand.hbm [shape: f32[2,4,2,128], index: 0, kind: input, shape index: {}]   ;;  %s797_s1 = inlined_call_operand.hbm [shape: s32[2,2,128], index: 1, kind: input, shape index: {}]   ;;  %s798_s2 = inlined_call_operand.hbm [shape: f32[1,1,1], index: 2, kind: output, shape index: {}]  }
   0x1   :  { %9 = vsyncpa [#allocation4 + $0x1], 0 }
   0x2   :  { %10 = vsyncpa [#allocation7], 0 }
   0x3   :  { %12 = vsyncpa [#allocation7 + $0x1], 0 }
   0x4   :  { %13 = vsyncpa [#allocation5], 0  ;;  %s683_s9 = smov 0   ;;  %s685_s10 = smov 0  }
   0x5   :  { %s687_s11 = smov 0   ;;  %s689_s12 = smov 0  }
   0x6   :  { %s691_s13 = smov 0   ;;  %s693_s14 = smov 0  }
   0x7 LB: > { %s409_s15 = sadd.s32 4294967295, %s662_s14   ;;  %s34_s16 = sadd.s32 1, %s658_s13  ;;  %s662_s14 = sphi %s693_s14, %s19_s14   ;;  %s658_s13 = sphi %s691_s13, %s806_s13   ;;  %s654_s12 = sphi %s689_s12, %s805_s12   ;;  %s650_s11 = sphi %s687_s11, %s804_s11   ;;  %s646_s10 = sphi %s685_s10, %s803_s10   ;;  %s642_s9 = sphi %s683_s9, %s802_s9  }
   0x8   : > { %p36_p0 = scmp.ge.s32.totalorder %s34_s16, 2  ;;  %s49_s17 = sadd.s32 1, %s650_s11 }
   0x9   : > { %p56_p1 = scmp.ne.s32.totalorder %s650_s11, %s646_s10  ;;  %p57_p2 = scmp.eq.s32.totalorder %s662_s14, 0 }
   0xa   : > { %s808_s16 = smov (%p36_p0, %s34_s16), 0  ;;  %p62_p4 = scmp.ne.s32.totalorder %s646_s10, %s642_s9 }
   0xb   : > { %p719_p3 = por %p57_p2, %p56_p1  ;;  %s44_s19 = ssub.s32 %s658_s13, %s808_s16 }
   0xc   : > { %p63_p5 = scmp.eq.s32.totalorder %s409_s15, 0  ;;  %p47_p6 = scmp.eq.s32.totalorder %s44_s19, 0 }
   0xd   : > { %p449_p8 = scmp.lt.s32.totalorder %s662_s14, 2  ;;  %s142_s22 = sand.u32 1, %s650_s11  }
   0xe   : > { %p728_p7 = por %p63_p5, %p62_p4  ;;  %s429_s23 = sshll.u32 %s658_s13, 3 }
   0xf   : > { %s734_s21 = scalar_select %p47_p6, %s650_s11, %s49_s17  }
  0x10   : > { %s412_s24 = sshll.u32 %s142_s22, 3  ;;  %s153_s27 = scalar_lea.hbm %s796_s0, %s429_s23 }
  0x11   : > { %s154_s28 = sshll.u32 %s153_s27, 4  ;;  %s146_s29 = scalar_lea.vmem [#allocation3], %s412_s24  ;;  %s155_s28 = int_to_ptr.hbm [resolvable:$true] %s154_s28 }
  0x12   : > { %s156_s30 = sshll.u32 %s146_s29, 4  ;;  %p743_p9 = pnand %p449_p8, %p719_p3  ;;  %s157_s30 = int_to_ptr.vmem [resolvable:$true] %s156_s30 }
  0x13   : > { %p417_p10 = scmp.ge.s32.totalorder %s662_s14, 1  ;;  %p185_p11 = scmp.lt.s32.totalorder %s662_s14, 3 }
  0x14   : > { %s143_s4 = scalar_lea.sflag [#allocation4], %s142_s22  ;;  %s664_s5 = smov 32  }
  0x15   : > { %s665_s6 = smov 2   ;;  %p186_p12 = pnand %p417_p10, %p185_p11 }
  0x16   : > { %445 = dma.hbm_to_vmem [thread:$0]  (!%p743_p9), %s155_s28, 128, %s157_s30, %s143_s4, %s664_s5, %s664_s5, %s665_s6  }
  0x17   : > { %s415_s7 = sshll.u32 %s142_s22, 1  ;;  %s416_s8 = sshll.u32 %s658_s13, 1 }
  0x18   : > { %s176_s18 = scalar_lea.hbm %s797_s1, %s416_s8  ;;  %s170_s23 = scalar_lea.vmem [#allocation6], %s415_s7 }
  0x19   : > { %s178_s19 = sshll.u32 %s176_s18, 4  ;;  %s180_s24 = sshll.u32 %s170_s23, 4  ;;  %s179_s19 = int_to_ptr.hbm [resolvable:$true] %s178_s19  ;;  %s181_s24 = int_to_ptr.vmem [resolvable:$true] %s180_s24 }
  0x1a   : > { %s167_s25 = scalar_lea.sflag [#allocation7], %s142_s22  ;;  %189 = sbr.rel (%p186_p12) target bundleno = 289 (0x121), region = 28 }
  0x1b   : > { %448 = dma.hbm_to_vmem [thread:$0]  (!%p743_p9), %s179_s19, 32, %s181_s24, %s167_s25  }
  0x1c   : > { %s191_s26 = sand.u32 (!%p186_p12), 1, %s646_s10  }
  0x1d   : > { %s418_s27 = sshll.u32 (!%p186_p12), %s191_s26, 3  ;;  %s192_s28 = scalar_lea.sflag (!%p186_p12), [#allocation4], %s191_s26 }
  0x1e   : > { %s195_s29 = scalar_lea.vmem (!%p186_p12), [#allocation3], %s418_s27 }
  0x1f   : > { %629 = dma.done.wait (%p728_p7), %s192_s28, 128  }
  0x20   : > { %631 = vsyncadd (%p728_p7), %s192_s28, 4294967168  ;;  %s419_s30 = sshll.u32 %s191_s26, 1  ;;  %s202_s4 = scalar_lea.sflag [#allocation7], %s191_s26 }
  0x21   : > { %s762_s5 = scalar_lea.vmem [#allocation6], %s419_s30 }
  0x22   : > { %633 = dma.done.wait (%p728_p7), %s202_s4, 32  }
  0x23   : > { %635 = vsyncadd (%p728_p7), %s202_s4, 4294967264  ;;  %p229_p13 = scmp.eq.s32.totalorder %s654_s12, 0 }
  0x24   : > { %v666_v0 = vmov (%p229_p13), 0.0  }
  0x25   : > { %234 = sbr.rel (!%p229_p13) target bundleno = 42 (0x2a), region = 40  ;;  %235 = vst [vmem:[#allocation2] sm:$0x3] (%p229_p13), %v666_v0 }
  0x2a PF: > { %v237_v1 = vld [vmem:[%s195_s29] sm:$0x3]  ;;  %v421_v2 = vld [vmem:[%s195_s29 + $0x2] sm:$0x3]  ;;  %v422_v4 = vld [vmem:[%s195_s29 + $0x4] sm:$0x3] }
  0x2b   : > { %v240_v3 = vmax.f32 %v237_v1, %v421_v2  ;;  %v423_v5 = vld [vmem:[%s195_s29 + $0x6] sm:$0x3]  ;;  %p288_p0 = scmp.eq.s32.totalorder %s654_s12, 1  ;;  %v236_v23 = vld [vmem:[%s762_s5] sm:$0x3] }
  0x2c   : > { %vm254_vm0 = vcmp.eq.s32.totalorder %v236_v23, 1  ;;  %vm261_vm1 = vcmp.eq.s32.totalorder %v236_v23, 2  ;;  %vm268_vm2 = vcmp.eq.s32.totalorder %v236_v23, 3  ;;  %v285_v43 = vld [vmem:[#allocation2] sm:$0x3]  ;;  %vm294_vm3 = vcmask (%p288_p0), 1041408  }
  0x2d   : > { %v243_v6 = vmax.f32 %v240_v3, %v422_v4  ;;  %vm306_vm4 = vcmask (%p288_p0), 0  }
  0x2f   : > { %v246_v7 = vmax.f32 %v243_v6, %v423_v5 }
  0x31   : > { %v247_v8 = vsub.f32 %v237_v1, %v246_v7  ;;  %v250_v9 = vsub.f32 %v421_v2, %v246_v7  ;;  %v257_v10 = vsub.f32 %v422_v4, %v246_v7  ;;  %v264_v11 = vsub.f32 %v423_v5, %v246_v7 }
  0x33   : > { %v248_v12 = vmul.f32 1.442695, %v247_v8  ;;  %v251_v13 = vmul.f32 1.442695, %v250_v9  ;;  %v258_v14 = vmul.f32 1.442695, %v257_v10  ;;  %v255_v26 = vsel %vm254_vm0, %v250_v9, %v247_v8 }
  0x34   : > { %v265_v15 = vmul.f32 1.442695, %v264_v11  ;;  %v262_v30 = vsel %vm261_vm1, %v257_v10, %v255_v26 }
  0x35   : > { %504 = vpow2.f32 %v248_v12  ;;  %v269_v35 = vsel %vm268_vm2, %v264_v11, %v262_v30 }
  0x36   : > { %506 = vpow2.f32 %v251_v13 }
  0x37   : > { %508 = vpow2.f32 %v258_v14 }
  0x38   : > { %510 = vpow2.f32 %v265_v15 }
  0x3b   : > { %v505_v16 = vpop.eup %504 }
  0x3c   : > { %v507_v17 = vpop.eup %506 }
  0x3d   : > { %v509_v18 = vpop.eup %508  ;;  %v253_v19 = vadd.f32 %v507_v17, %v505_v16  ;;  %v256_v24 = vsel %vm254_vm0, %v507_v17, %v505_v16 }
  0x3e   : > { %v511_v20 = vpop.eup %510  ;;  %v263_v27 = vsel %vm261_vm1, %v509_v18, %v256_v24 }
  0x3f   : > { %v260_v21 = vadd.f32 %v509_v18, %v253_v19  ;;  %v270_v32 = vsel %vm268_vm2, %v511_v20, %v263_v27 }
  0x41   : > { %v267_v22 = vadd.f32 %v511_v20, %v260_v21 }
  0x43   : > { %512 = vrcp.f32 %v267_v22 }
  0x44   : > { %514 = vlog2.f32 %v267_v22 }
  0x49   : > { %v513_v25 = vpop.eup %512 }
  0x4a   : > { %v276_v28 = vmul.f32 %v513_v25, %v267_v22  ;;  %v515_v29 = vpop.eup %514 }
  0x4b   : > { %v272_v33 = vmul.f32 0.6931472, %v515_v29 }
  0x4c   : > { %v277_v31 = vsub.f32 2.0, %v276_v28 }
  0x4d   : > { %v273_v37 = vsub.f32 %v269_v35, %v272_v33 }
  0x4e   : > { %v278_v34 = vmul.f32 %v513_v25, %v277_v31 }
  0x4f   : > { %v274_v40 = vmin.f32 %v273_v37, 0.0 }
  0x50   : > { %v279_v36 = vmul.f32 %v278_v34, %v270_v32 }
  0x52   : > { %v280_v38 = vsub.f32 1.0, %v279_v36 }
  0x54   : > { %v281_v39 = vmax.f32 %v280_v38, 0.0 }
  0x56   : > { %v282_v41 = vmul.f32 %v281_v39, %v281_v39 }
  0x58   : > { %v283_v42 = vsub.f32 0.0, %v282_v41 }
  0x5a   : > { %v284_v44 = vmul.f32 %v283_v42, %v274_v40  ;;  %292 = sbr.rel (!%p288_p0) target bundleno = 283 (0x11b), region = 44 }
  0x5c   : > { %v286_v45 = vadd.f32 %v285_v43, %v284_v44 }
  0x5e   : > { %287 = vst [vmem:[#allocation2] sm:$0x3] %v286_v45 }
  0x65   : > { %v293_v46 = vld [vmem:[#allocation2] sm:$0x3] }
  0x66   : > { %v295_v47 = vsel %vm294_vm3, %v293_v46, 0.0 }
  0x67   : > { %296 = vadd.xlane.f32.xlu0 %v295_v47 }
  0xda   : > { %v297_v48 = vpop.xlane.xlu0 %296 }
  0xdb   : > { %v298_v49 = vrot.slane %v297_v48, 4 }
  0xdd   : > { %v299_v50 = vadd.f32 %v298_v49, %v297_v48 }
  0xdf   : > { %v300_v51 = vrot.slane %v299_v50, 2 }
  0xe1   : > { %v301_v52 = vadd.f32 %v300_v51, %v299_v50 }
  0xe3   : > { %v302_v53 = vrot.slane %v301_v52, 1 }
  0xe5   : > { %v303_v54 = vadd.f32 %v302_v53, %v301_v52 }
  0xe7   : > { %432 = vpush %v303_v54 }
 0x118   : > { %s433_s20 = spop %432 }
 0x119   : > { %v305_v55 = vstv %s433_s20 }
 0x11a   : > { %307 = vst.msk [vmem:[#allocation8] sm:$0x1] %vm306_vm4, %v305_v55 }
 0x11b PF: > { %p450_p1 = scmp.eq.s32.totalorder %s409_s15, 1  ;;  %s317_s3 = sshll.u32 %s798_s2, 4  ;;  %s318_s3 = int_to_ptr.hbm [resolvable:$true] %s317_s3 }
 0x11c   : > { %s667_s6 = smov [#allocation8]  }
 0x11d   : > { %s315_s7 = sshll.u32 %s667_s6, 4  ;;  %s316_s7 = int_to_ptr.vmem [resolvable:$true] %s315_s7 }
 0x11e   : > { %439 = dma.vmem_to_hbm [thread:$0]  (%p450_p1), %s316_s7, 16, %s318_s3, [#allocation5]  }
 0x11f   : > { %637 = dma.done.wait (%p450_p1), [#allocation5], 16  }
 0x120   : > { %639 = vsyncadd (%p450_p1), [#allocation5], 4294967280 }
 0x121 PF: > { %s19_s14 = sadd.s32 1, %s662_s14   ;;  %s802_s9 = smov %s646_s10 }
 0x122   : > { %p16_p2 = scmp.ge.s32.totalorder %s19_s14, 4   ;;  %s803_s10 = smov %s650_s11 }
 0x123   : > { %s804_s11 = smov %s734_s21  ;;  %s805_s12 = smov %s658_s13 }
 0x124   : > { %s806_s13 = smov %s808_s16  ;;  %18 = sbr.rel (!%p16_p2) target bundleno = 7 (0x7), region = 90 }
 0x129   :  { %331 = vsyncpa [#allocation4], 1 }
 0x12a   :  { %333 = vsyncpa [#allocation4 + $0x1], 1 }
 0x12b   :  { %334 = vsyncpa [#allocation7], 1 }
 0x12c   :  { %336 = vsyncpa [#allocation7 + $0x1], 1 }
 0x12d   :  { %337 = vsyncpa [#allocation5], 1 }
 0x12e   :  { %339 = vsyncpa [#allocation5 + $0x1], 1 }

</bundles_post_ra>
